<compile_context>
chip_gen: v5e
topology: v5e:2x2
jax: 0.10.0
libtpu: 0.0.40
codegen_flags: <defaults>
</compile_context>

<pallas_src>
import jax
import jax.numpy as jnp
from jax.experimental import pallas as pl
from jax.experimental.pallas import tpu as pltpu


def attention_block_kernel(x_ref, w1_ref, b1_ref, w2_ref, b2_ref, o_ref):
    # x_ref: (C, TS) tile (channels on sublanes, spatial on lanes)
    # w1_ref: (Ch, C), b1_ref: (Ch, 1), w2_ref: (1, Ch), b2_ref: (1, 1)
    x = x_ref[...].astype(jnp.float32)

    # conv1x1 #1 + ReLU
    h = jnp.dot(w1_ref[...], x, preferred_element_type=jnp.float32) + b1_ref[...]
    h = jnp.maximum(h, 0.0)

    # conv1x1 #2 + Sigmoid  -> per-pixel scalar attention, shape (1, TS)
    logit = jnp.dot(w2_ref[...], h, preferred_element_type=jnp.float32) + b2_ref[...]
    attn = jax.nn.sigmoid(logit)

    # broadcast multiply over the channel (sublane) axis
    o_ref[...] = (x * attn).astype(o_ref.dtype)


def _pick_tile_s(S, max_tile=8192):
    """Spatial tile size: full extent if it fits, else a large multiple of 128.

    max_tile=8192 lanes * C=32 sublanes * 4 B = 1 MiB/buffer; with double-buffered
    input + output that is ~4 MiB, comfortably under the v5e 16 MiB / v7x 32 MiB
    default scoped-VMEM limits.
    """
    if S <= max_tile:
        return S            # full last dim is always a legal block
    return max_tile         # multiple of 128; ragged edge handled via cdiv grid


def attention_block(x_nchw, w1, b1, w2, b2, *, max_tile_s=8192):
    """x_nchw: [N, C, H, W]. w1: [C//8, C], b1: [C//8], w2: [1, C//8], b2: [1].

    Weight layout matches PyTorch Conv2d(out, in, 1).weight[:, :, 0, 0].
    """
    N, C, H, W = x_nchw.shape
    Ch = w1.shape[0]
    S = H * W

    # NCHW -> (N, C, S): contiguous reshape, no data movement.
    x_flat = x_nchw.reshape(N, C, S)

    b1_2d = b1.reshape(Ch, 1)
    b2_2d = b2.reshape(1, 1)

    tile_s = _pick_tile_s(S, max_tile_s)
    grid = (N, pl.cdiv(S, tile_s))   # ragged edge allowed: per-column math, padded
                                     # lanes never contaminate valid columns and
                                     # out-of-bounds stores are masked.

    out_flat = pl.pallas_call(
        attention_block_kernel,
        out_shape=jax.ShapeDtypeStruct((N, C, S), x_nchw.dtype),
        grid_spec=pltpu.PrefetchScalarGridSpec(
            num_scalar_prefetch=0,
            grid=grid,
            in_specs=[
                # x tile: batch dim squeezed, channels full, large lane-dense spatial tile
                pl.BlockSpec((None, C, tile_s), lambda n, s: (n, 0, s)),
                pl.BlockSpec((Ch, C), lambda n, s: (0, 0)),   # w1 (resident)
                pl.BlockSpec((Ch, 1), lambda n, s: (0, 0)),   # b1 (resident)
                pl.BlockSpec((1, Ch), lambda n, s: (0, 0)),   # w2 (resident)
                pl.BlockSpec((1, 1), lambda n, s: (0, 0)),    # b2 (resident)
            ],
            out_specs=pl.BlockSpec((None, C, tile_s), lambda n, s: (n, 0, s)),
        ),
        compiler_params=pltpu.CompilerParams(
            # Both axes are data-parallel -> shardable across v7x's two TensorCores.
            dimension_semantics=("parallel", "parallel"),
        ),
    )(x_flat, w1, b1_2d, w2, b2_2d)

    return out_flat.reshape(N, C, H, W)   # free reshape back to NCHW


def reference(x_nchw, w1, b1, w2, b2):
    # Pure-JAX reference mirroring the PyTorch module semantics (NCHW throughout).
    N, C, H, W = x_nchw.shape
    xf = x_nchw.reshape(N, C, H * W)
    h = jnp.maximum(jnp.einsum("oc,ncs->nos", w1, xf) + b1[None, :, None], 0.0)
    a = jax.nn.sigmoid(jnp.einsum("oh,nhs->nos", w2, h) + b2[None, :, None])
    return (xf * a).reshape(N, C, H, W)


if __name__ == "__main__":
    key = jax.random.PRNGKey(0)
    k_x, k_w1, k_b1, k_w2, k_b2 = jax.random.split(key, 5)

    N, C, H, W = 2, 32, 16, 16   # in_channels=32 -> hidden = C // 8 = 4
    Ch = C // 8

    x = jax.random.normal(k_x, (N, C, H, W), dtype=jnp.float32)

    # Conv2d 1x1 weights in [out, in] form (== weight[:, :, 0, 0]).
    w1 = jax.random.normal(k_w1, (Ch, C), dtype=jnp.float32) * 0.1
    b1 = jax.random.normal(k_b1, (Ch,), dtype=jnp.float32) * 0.1
    w2 = jax.random.normal(k_w2, (1, Ch), dtype=jnp.float32) * 0.1
    b2 = jax.random.normal(k_b2, (1,), dtype=jnp.float32) * 0.1

    out = attention_block(x, w1, b1, w2, b2)
    out = jax.block_until_ready(out)

    ref = reference(x, w1, b1, w2, b2)
    assert out.shape == x.shape
    assert jnp.allclose(out, ref, atol=1e-5, rtol=1e-5), "mismatch vs reference"

    print("KERNEL_OK")
</pallas_src>

<mosaic_0001>
module attributes {stable_mosaic.version = 11 : i64} {
  func.func @attention_block_kernel(%arg0: i32, %arg1: i32, %arg2: memref<1x32x256xf32, #tpu.memory_space<vmem>>, %arg3: memref<4x32xf32, #tpu.memory_space<vmem>>, %arg4: memref<4x1xf32, #tpu.memory_space<vmem>>, %arg5: memref<1x4xf32, #tpu.memory_space<vmem>>, %arg6: memref<1x1xf32, #tpu.memory_space<vmem>>, %arg7: memref<1x32x256xf32, #tpu.memory_space<vmem>>) attributes {dimension_semantics = [#tpu.dimension_semantics<parallel>, #tpu.dimension_semantics<parallel>], iteration_bounds = array<i64: 2, 1>, scalar_prefetch = 0 : i64, scratch_operands = 0 : i64, tpu.core_type = #tpu.core_type<tc>, window_params = [{transform_indices = @transform_0, window_bounds = array<i64: 1, 32, 256>}, {pipeline_mode = #tpu.pipeline_mode<synchronous>, transform_indices = @transform_1, window_bounds = array<i64: 4, 32>}, {pipeline_mode = #tpu.pipeline_mode<synchronous>, transform_indices = @transform_2, window_bounds = array<i64: 4, 1>}, {pipeline_mode = #tpu.pipeline_mode<synchronous>, transform_indices = @transform_3, window_bounds = array<i64: 1, 4>}, {pipeline_mode = #tpu.pipeline_mode<synchronous>, transform_indices = @transform_4, window_bounds = array<i64: 1, 1>}, {transform_indices = @transform_5, window_bounds = array<i64: 1, 32, 256>}]} {
    %c0 = arith.constant 0 : index
    %c0_0 = arith.constant 0 : index
    %c0_1 = arith.constant 0 : index
    %0 = vector.load %arg2[%c0, %c0_0, %c0_1] : memref<1x32x256xf32, #tpu.memory_space<vmem>>, vector<1x32x256xf32>
    %1 = vector.shape_cast %0 : vector<1x32x256xf32> to vector<32x256xf32>
    %c0_2 = arith.constant 0 : index
    %c0_3 = arith.constant 0 : index
    %2 = vector.load %arg3[%c0_2, %c0_3] : memref<4x32xf32, #tpu.memory_space<vmem>>, vector<4x32xf32>
    %cst = arith.constant dense<0.000000e+00> : vector<4x256xf32>
    %3 = tpu.matmul %2, %1, %cst {dimension_numbers = #tpu.dot_dimension_numbers<[1], [0], [0], [1], [0, 0, 1, 1], [], []>} : vector<4x32xf32>, vector<32x256xf32>, vector<4x256xf32> -> vector<4x256xf32>
    %c0_4 = arith.constant 0 : index
    %c0_5 = arith.constant 0 : index
    %4 = vector.load %arg4[%c0_4, %c0_5] : memref<4x1xf32, #tpu.memory_space<vmem>>, vector<4x1xf32>
    %5 = vector.broadcast %4 : vector<4x1xf32> to vector<4x256xf32>
    %6 = arith.addf %3, %5 : vector<4x256xf32>
    %cst_6 = arith.constant 0.000000e+00 : f32
    %7 = vector.broadcast %cst_6 : f32 to vector<4x256xf32>
    %8 = arith.maximumf %6, %7 : vector<4x256xf32>
    %c0_7 = arith.constant 0 : index
    %c0_8 = arith.constant 0 : index
    %9 = vector.load %arg5[%c0_7, %c0_8] : memref<1x4xf32, #tpu.memory_space<vmem>>, vector<1x4xf32>
    %cst_9 = arith.constant dense<0.000000e+00> : vector<1x256xf32>
    %10 = tpu.matmul %9, %8, %cst_9 {dimension_numbers = #tpu.dot_dimension_numbers<[1], [0], [0], [1], [0, 0, 1, 1], [], []>} : vector<1x4xf32>, vector<4x256xf32>, vector<1x256xf32> -> vector<1x256xf32>
    %c0_10 = arith.constant 0 : index
    %c0_11 = arith.constant 0 : index
    %11 = vector.load %arg6[%c0_10, %c0_11] : memref<1x1xf32, #tpu.memory_space<vmem>>, vector<1x1xf32>
    %12 = vector.broadcast %11 : vector<1x1xf32> to vector<1x256xf32>
    %13 = arith.addf %10, %12 : vector<1x256xf32>
    %14 = arith.negf %13 : vector<1x256xf32>
    %15 = math.exp %14 : vector<1x256xf32>
    %cst_12 = arith.constant 1.000000e+00 : f32
    %16 = vector.broadcast %cst_12 : f32 to vector<1x256xf32>
    %17 = arith.addf %16, %15 : vector<1x256xf32>
    %18 = arith.divf %16, %17 : vector<1x256xf32>
    %19 = vector.broadcast %18 : vector<1x256xf32> to vector<32x256xf32>
    %20 = arith.mulf %1, %19 : vector<32x256xf32>
    %c0_13 = arith.constant 0 : index
    %c0_14 = arith.constant 0 : index
    %c0_15 = arith.constant 0 : index
    %21 = vector.load %arg7[%c0_13, %c0_14, %c0_15] : memref<1x32x256xf32, #tpu.memory_space<vmem>>, vector<1x32x256xf32>
    %22 = vector.shape_cast %21 : vector<1x32x256xf32> to vector<32x256xf32>
    %23 = vector.shape_cast %20 : vector<32x256xf32> to vector<1x32x256xf32>
    tpu.vector_store %arg7[%c0_13, %c0_14, %c0_15], %23 {strides = array<i32>} : memref<1x32x256xf32, #tpu.memory_space<vmem>>, vector<1x32x256xf32>,
    return
  }
  func.func @transform_0(%arg0: i32, %arg1: i32) -> (i32, i32, i32) {
    %c0_i32 = arith.constant 0 : i32
    %c0_i32_0 = arith.constant 0 : i32
    return %arg0, %c0_i32, %arg1 : i32, i32, i32
  }
  func.func @transform_1(%arg0: i32, %arg1: i32) -> (i32, i32) {
    %c0_i32 = arith.constant 0 : i32
    %c0_i32_0 = arith.constant 0 : i32
    %c0_i32_1 = arith.constant 0 : i32
    return %c0_i32, %c0_i32_0 : i32, i32
  }
  func.func @transform_2(%arg0: i32, %arg1: i32) -> (i32, i32) {
    %c0_i32 = arith.constant 0 : i32
    %c0_i32_0 = arith.constant 0 : i32
    %c0_i32_1 = arith.constant 0 : i32
    return %c0_i32, %c0_i32_0 : i32, i32
  }
  func.func @transform_3(%arg0: i32, %arg1: i32) -> (i32, i32) {
    %c0_i32 = arith.constant 0 : i32
    %c0_i32_0 = arith.constant 0 : i32
    %c0_i32_1 = arith.constant 0 : i32
    return %c0_i32, %c0_i32_0 : i32, i32
  }
  func.func @transform_4(%arg0: i32, %arg1: i32) -> (i32, i32) {
    %c0_i32 = arith.constant 0 : i32
    %c0_i32_0 = arith.constant 0 : i32
    %c0_i32_1 = arith.constant 0 : i32
    return %c0_i32, %c0_i32_0 : i32, i32
  }
  func.func @transform_5(%arg0: i32, %arg1: i32) -> (i32, i32, i32) {
    %c0_i32 = arith.constant 0 : i32
    %c0_i32_0 = arith.constant 0 : i32
    return %arg0, %c0_i32, %arg1 : i32, i32, i32
  }
}

</mosaic_0001>

<bundles_post_ra>
// kernel: tpu_custom_call.1
= control target key start
LH: loop header
LB: loop body
LE: loop exit
PB: predicated region body
PF: predicated region fallthrough
CT: control target
= control target key end

     0   :  { %s966_s0 = inlined_call_operand.hbm [shape: f32[2,32,256], index: 0, kind: input, shape index: {}]   ;;  %s967_s1 = inlined_call_operand.vmem [shape: f32[4,32], index: 1, kind: input, shape index: {}]   ;;  %s968_s2 = inlined_call_operand.vmem [shape: f32[4,1], index: 2, kind: input, shape index: {}]   ;;  %s969_s3 = inlined_call_operand.vmem [shape: f32[1,4], index: 3, kind: input, shape index: {}]   ;;  %s970_s4 = inlined_call_operand.<no memory space> [shape: f32[1,1], index: 4, kind: input, shape index: {}]   ;;  %s971_s5 = inlined_call_operand.hbm [shape: f32[2,32,256], index: 5, kind: output, shape index: {}]  }
   0x1   :  { %v10_v0 = vstv %s970_s4 }
   0x2   :  { %11 = vst [vmem:[#allocation2] sm:$0x1] %v10_v0 }
   0x3   :  { %12 = vsyncpa [#allocation4], 0 }
   0x4   :  { %14 = vsyncpa [#allocation4 + $0x1], 0 }
   0x5   :  { %15 = vsyncpa [#allocation5], 0 }
   0x6   :  { %17 = vsyncpa [#allocation5 + $0x1], 0  ;;  %s801_s20 = smov 0   ;;  %s803_s21 = smov 0  }
   0x7   :  { %s805_s22 = smov 0   ;;  %s807_s23 = smov 0  }
   0x8   :  { %s809_s24 = smov 0   ;;  %s811_s25 = smov 0  }
   0x9 LB: > { %s548_s4 = sadd.s32 4294967295, %s761_s25   ;;  %s549_s26 = sadd.s32 4294967294, %s761_s25   ;;  %s761_s25 = sphi %s811_s25, %s23_s25   ;;  %s757_s24 = sphi %s809_s24, %s980_s24   ;;  %s753_s23 = sphi %s807_s23, %s979_s23   ;;  %s749_s22 = sphi %s805_s22, %s978_s22   ;;  %s745_s21 = sphi %s803_s21, %s977_s21   ;;  %s741_s20 = sphi %s801_s20, %s976_s20  }
   0xa   : > { %s35_s27 = sadd.s32 1, %s757_s24  ;;  %s44_s28 = sadd.s32 1, %s749_s22 }
   0xb   : > { %p37_p0 = scmp.ge.s32.totalorder %s35_s27, 2  ;;  %p51_p1 = scmp.ne.s32.totalorder %s749_s22, %s745_s21 }
   0xc   : > { %p52_p2 = scmp.eq.s32.totalorder %s761_s25, 0  ;;  %p57_p3 = scmp.ne.s32.totalorder %s745_s21, %s741_s20 }
   0xd   : > { %s982_s27 = smov (%p37_p0, %s35_s27), 0  ;;  %p58_p5 = scmp.eq.s32.totalorder %s548_s4, 0 }
   0xe   : > { %p842_p4 = por %p52_p2, %p51_p1  ;;  %s39_s30 = ssub.s32 %s757_s24, %s982_s27 }
   0xf   : > { %p167_p6 = scmp.eq.s32.totalorder %s548_s4, 1  ;;  %p42_p7 = scmp.eq.s32.totalorder %s39_s30, 0 }
  0x10   : > { %p848_p8 = por %p58_p5, %p57_p3  ;;  %p173_p10 = scmp.eq.s32.totalorder %s549_s26, 1 }
  0x11   : > { %p852_p9 = por %p167_p6, %p51_p1  ;;  %p551_p12 = scmp.ge.s32.totalorder %s761_s25, 2 }
  0x12   : > { %s857_s8 = scalar_select %p42_p7, %s749_s22, %s44_s28  }
  0x13   : > { %p859_p11 = por %p173_p10, %p57_p3  ;;  %p585_p13 = scmp.lt.s32.totalorder %s761_s25, 2 }
  0x14   : > { %s205_s10 = sand.u32 1, %s749_s22   ;;  %s571_s12 = sshll.u32 %s757_s24, 6 }
  0x15   : > { %s552_s11 = sshll.u32 %s205_s10, 6  ;;  %s216_s15 = scalar_lea.hbm %s966_s0, %s571_s12 }
  0x16   : > { %s209_s16 = scalar_lea.vmem [#allocation3], %s552_s11  ;;  %s217_s18 = sshll.u32 %s216_s15, 4  ;;  %s218_s18 = int_to_ptr.hbm [resolvable:$true] %s217_s18 }
  0x17   : > { %s219_s17 = sshll.u32 %s209_s16, 4  ;;  %p578_p0 = pnand %p585_p13, %p842_p4  ;;  %s220_s17 = int_to_ptr.vmem [resolvable:$true] %s219_s17 }
  0x18   : > { %p555_p1 = scmp.ge.s32.totalorder %s761_s25, 1  ;;  %s206_s19 = scalar_lea.sflag [#allocation4], %s205_s10 }
  0x19   : > { %s763_s4 = smov 256   ;;  %s764_s26 = smov 16  }
  0x1a   : > { %580 = dma.hbm_to_vmem [thread:$0]  (!%p578_p0), %s218_s18, 1024, %s220_s17, %s206_s19, %s763_s4, %s763_s4, %s764_s26  }
  0x1b   : > { %p227_p2 = scmp.lt.s32.totalorder %s761_s25, 3 }
  0x1d   : > { %p228_p3 = pnand %p555_p1, %p227_p2 }
  0x1e   : > { %s875_s28 = sand.u32 (!%p228_p3), 1, %s745_s21  }
  0x1f   : > { %231 = sbr.rel (%p228_p3) target bundleno = 353 (0x161), region = 40  ;;  %s556_s30 = sshll.u32 (!%p228_p3), %s875_s28, 6 }
  0x20   : > { %s234_s11 = scalar_lea.sflag (!%p228_p3), [#allocation4], %s875_s28  ;;  %s237_s29 = scalar_lea.vmem (!%p228_p3), [#allocation3], %s556_s30 }
  0x24   : > { %732 = dma.done.wait (%p848_p8), %s234_s11, 1024  }
  0x25   : > { %734 = vsyncadd (%p848_p8), %s234_s11, 4294966272  ;;  %v765_v1 = vmov 0   ;;  %v885_v2 = vld [vmem:[%s237_s29 + $0x30] sm:$0xff]  ;;  %v887_v3 = vld [vmem:[%s237_s29 + $0x38] sm:$0xff]  ;;  %vm282_vm0 = vcmask 261120   ;;  %vm340_vm1 = vcmask 1043456  }
  0x26   : > { %640 = vset.pattern.permute.xlu0 %v765_v1  ;;  %v889_v4 = vld [vmem:[%s237_s29 + $0x20] sm:$0xff]  ;;  %298 = vmatpush.msra.mxu0 %v885_v2  ;;  %v893_v5 = vld [vmem:[%s237_s29 + $0x28] sm:$0xff]  ;;  %v895_v6 = vld [vmem:[%s237_s29 + $0x10] sm:$0xff]  ;;  %vm336_vm2 = vcmask 31744   ;;  %s572_s16 = sshll.u32 %s753_s23, 6  ;;  %s264_s4 = scalar_lea.vmem [#allocation6], %s556_s30 }
  0x27   : > { %318 = vmatpush.msra.mxu1 %v887_v3  ;;  %v897_v7 = vld [vmem:[%s237_s29 + $0x18] sm:$0xff]  ;;  %v904_v9 = vld [vmem:[%s237_s29] sm:$0xff]  ;;  %v906_v10 = vld [vmem:[%s237_s29 + $0x8] sm:$0xff]  ;;  %s457_s19 = scalar_lea.hbm %s971_s5, %s572_s16  ;;  %s458_s23 = sshll.u32 %s264_s4, 4  ;;  %s459_s23 = int_to_ptr.vmem [resolvable:$true] %s458_s23 }
  0x28   : > { %299 = vmatpush.msra.mxu0 %v889_v4  ;;  %v276_v8 = vld [vmem:[%s968_s2] sm:$0xf]  ;;  %s460_s26 = sshll.u32 %s457_s19, 4  ;;  %s444_s30 = scalar_lea.sflag [#allocation5], %s875_s28  ;;  %s461_s26 = int_to_ptr.hbm [resolvable:$true] %s460_s26 }
  0x29   : > { %319 = vmatpush.msra.mxu1 %v893_v5  ;;  %279 = vperm.xlu0 %640, %v276_v8   ;;  %v275_v11 = vld [vmem:[%s967_s1] sm:$0xf]  ;;  %s693_s11 = sshra.s32 %s461_s26, 4  ;;  %s699_s12 = scalar_lea.hbm %s971_s5, 128  ;;  %s694_s11 = int_to_ptr.hbm [resolvable:$true] %s693_s11 }
  0x2a   : > { %300 = vmatpush.msra.mxu0 %v895_v6  ;;  %v329_v12 = vld [vmem:[#allocation2] sm:$0x1]  ;;  %s695_s29 = scalar_lea.hbm %s694_s11, 64  ;;  %p700_p7 = scmp.lt.s32.totalorder %s694_s11, %s971_s5 }
  0x2b   : > { %320 = vmatpush.msra.mxu1 %v897_v7  ;;  %v328_v20 = vld [vmem:[%s969_s3] sm:$0x1]  ;;  %p696_p4 = scmp.ne.s32.totalorder %s694_s11, %s695_s29  ;;  %p701_p8 = scmp.lt.s32.totalorder %s699_s12, %s695_s29 }
  0x2c   : > { %301 = vmatpush.msra.mxu0 %v904_v9 }
  0x2d   : > { %321 = vmatpush.msra.mxu1 %v906_v10  ;;  %558 = vmatmul.msk.f32.vlgmr.msra.gmra.mxu0 %vm282_vm0, %v275_v11  ;;  %p697_p5 = pnand %p696_p4, %p852_p9  ;;  %p702_p10 = por %p701_p8, %p700_p7 }
  0x2e   : > { %559 = vmatmul.msk.f32.vlgmr.msra.gmra.mxu1 %vm282_vm0, %v275_v11 }
  0x2f   : > { %p698_p6 = pneg %p697_p5 }
  0x31   : > { %332 = vperm.xlu0 %640, %v329_v12   ;;  %p703_p13 = pnand %p702_p10, %p698_p6 }
  0x9b   : > { %v280_v13 = vpop.permute.xlu0 %279 }
  0xa3   : > { %v333_v21 = vpop.permute.xlu0 %332 }
  0xa4   : > { %v335_v22 = vperm.slane %v333_v21, 0 }
  0xaa   : > { %v303_v14 = vpop.f32.mrf.mxu0 }
  0xab   : > { %v323_v15 = vpop.f32.mrf.mxu1  ;;  %v304_v16 = vadd.f32 %v303_v14, %v280_v13 }
  0xac   : > { %v324_v17 = vadd.f32 %v323_v15, %v280_v13 }
  0xad   : > { %v326_v18 = vmax.f32 %v304_v16, 0.0 }
  0xae   : > { %v327_v19 = vmax.f32 %v324_v17, 0.0 }
  0xaf   : > { %560 = vmatpush.msk.msra.mxu2 %vm340_vm1, %v326_v18 }
  0xb0   : > { %562 = vmatpush.msk.msra.mxu3 %vm340_vm1, %v327_v19  ;;  %561 = vmatmul.msk.f32.vlgmr.msra.gmra.mxu2 %vm336_vm2, %v328_v20 }
  0xb1   : > { %563 = vmatmul.msk.f32.vlgmr.msra.gmra.mxu3 %vm336_vm2, %v328_v20 }
 0x133   : > { %v364_v23 = vpop.f32.mrf.mxu2 }
 0x134   : > { %v384_v24 = vpop.f32.mrf.mxu3  ;;  %v365_v25 = vadd.f32 %v364_v23, %v335_v22 }
 0x135   : > { %v385_v26 = vadd.f32 %v384_v24, %v335_v22 }
 0x136   : > { %v564_v27 = vmul.f32 -1.442695, %v365_v25 }
 0x137   : > { %v565_v28 = vmul.f32 -1.442695, %v385_v26 }
 0x138   : > { %641 = vpow2.f32 %v564_v27 }
 0x139   : > { %643 = vpow2.f32 %v565_v28 }
 0x13e   : > { %v642_v29 = vpop.eup %641 }
 0x13f   : > { %v644_v30 = vpop.eup %643  ;;  %v393_v31 = vadd.f32 1.0, %v642_v29 }
 0x140   : > { %v394_v32 = vadd.f32 1.0, %v644_v30 }
 0x141   : > { %645 = vrcp.f32 %v393_v31  ;;  %v406_v38 = vand.u32 2147483648, %v393_v31  ;;  %v404_v41 = vand.u32 2147483647, %v393_v31  ;;  %vm400_vm5 = vweird.f32 %v393_v31 }
 0x142   : > { %647 = vrcp.f32 %v394_v32  ;;  %v421_v42 = vand.u32 2147483648, %v394_v32  ;;  %v419_v44 = vand.u32 2147483647, %v394_v32  ;;  %vm415_vm7 = vweird.f32 %v394_v32 }
 0x143   : > { %v407_v46 = vor.u32 1.1754944e-38, %v406_v38  ;;  %vm405_vm8 = vcmp.eq.f32.partialorder %v404_v41, 8.507059e+37 }
 0x144   : > { %v422_v49 = vor.u32 1.1754944e-38, %v421_v42  ;;  %vm420_vm10 = vcmp.eq.f32.partialorder %v419_v44, 8.507059e+37 }
 0x147   : > { %v646_v33 = vpop.eup %645 }
 0x148   : > { %v648_v34 = vpop.eup %647  ;;  %v396_v35 = vmul.f32 %v646_v33, %v393_v31  ;;  %vm401_vm3 = vweird.f32 %v646_v33 }
 0x149   : > { %v411_v36 = vmul.f32 %v648_v34, %v394_v32  ;;  %vm416_vm4 = vweird.f32 %v648_v34  ;;  %vm402_vm6 = vmor %vm400_vm5, %vm401_vm3 }
 0x14a   : > { %v397_v37 = vsub.f32 1.0, %v396_v35  ;;  %vm417_vm9 = vmor %vm415_vm7, %vm416_vm4 }
 0x14b   : > { %v412_v39 = vsub.f32 1.0, %v411_v36 }
 0x14c   : > { %v398_v40 = vmul.f32 %v646_v33, %v397_v37 }
 0x14d   : > { %v413_v43 = vmul.f32 %v648_v34, %v412_v39 }
 0x14e   : > { %v399_v45 = vadd.f32 %v646_v33, %v398_v40 }
 0x14f   : > { %v414_v47 = vadd.f32 %v648_v34, %v413_v43 }
 0x150   : > { %v403_v48 = vsel %vm402_vm6, %v646_v33, %v399_v45 }
 0x151   : > { %v408_v50 = vsel %vm405_vm8, %v407_v46, %v403_v48  ;;  %v418_v51 = vsel %vm417_vm9, %v648_v34, %v414_v47 }
 0x152   : > { %v425_v52 = vperm.slane %v408_v50, 0  ;;  %v423_v53 = vsel %vm420_vm10, %v422_v49, %v418_v51 }
 0x153   : > { %v426_v54 = vperm.slane %v423_v53, 0 }
 0x154   : > { %v427_v55 = vmul.f32 %v425_v52, %v904_v9  ;;  %v429_v56 = vmul.f32 %v425_v52, %v895_v6  ;;  %v431_v57 = vmul.f32 %v425_v52, %v889_v4  ;;  %v433_v58 = vmul.f32 %v425_v52, %v885_v2 }
 0x155   : > { %v428_v59 = vmul.f32 %v426_v54, %v906_v10  ;;  %v430_v60 = vmul.f32 %v426_v54, %v897_v7  ;;  %v432_v61 = vmul.f32 %v426_v54, %v893_v5  ;;  %v434_v62 = vmul.f32 %v426_v54, %v887_v3 }
 0x156   : > { %435 = vst [vmem:[%s264_s4] sm:$0xff] %v427_v55 }
 0x157   : > { %437 = vst [vmem:[%s264_s4 + $0x10] sm:$0xff] %v429_v56 }
 0x158   : > { %439 = vst [vmem:[%s264_s4 + $0x20] sm:$0xff] %v431_v57 }
 0x159   : > { %441 = vst [vmem:[%s264_s4 + $0x30] sm:$0xff] %v433_v58 }
 0x15a   : > { %436 = vst [vmem:[%s264_s4 + $0x8] sm:$0xff] %v428_v59 }
 0x15b   : > { %438 = vst [vmem:[%s264_s4 + $0x18] sm:$0xff] %v430_v60 }
 0x15c   : > { %440 = vst [vmem:[%s264_s4 + $0x28] sm:$0xff] %v432_v61 }
 0x15d   : > { %442 = vst [vmem:[%s264_s4 + $0x38] sm:$0xff] %v434_v62 }
 0x15e   : > { %706 = shalt.err (!%p703_p13)
}
 0x15f   : > { %s766_s28 = smov 256   ;;  %s767_s15 = smov 16  }
 0x160   : > { %575 = dma.vmem_to_hbm [thread:$0]  (%p852_p9), %s459_s23, 1024, %s461_s26, %s444_s30, %s766_s28, %s766_s28, %s767_s15  }
 0x161 PF: > { %s475_s16 = sand.u32 1, %s741_s20   ;;  %p582_p0 = pnand %p551_p12, %p859_p11 }
 0x162   : > { %s476_s17 = scalar_lea.sflag [#allocation5], %s475_s16 }
 0x163   : > { %p583_p1 = pneg %p582_p0 }
 0x165   : > { %736 = dma.done.wait (%p583_p1), %s476_s17, 1024  }
 0x166   : > { %738 = vsyncadd (%p583_p1), %s476_s17, 4294966272  ;;  %s23_s25 = sadd.s32 1, %s761_s25   ;;  %s976_s20 = smov %s745_s21 }
 0x167   : > { %p20_p2 = scmp.ge.s32.totalorder %s23_s25, 4   ;;  %s977_s21 = smov %s749_s22 }
 0x168   : > { %s978_s22 = smov %s857_s8  ;;  %s979_s23 = smov %s757_s24 }
 0x169   : > { %s980_s24 = smov %s982_s27  ;;  %22 = sbr.rel (!%p20_p2) target bundleno = 9 (0x9), region = 85 }
 0x16e   :  { %482 = vsyncpa [#allocation4], 1 }
 0x16f   :  { %484 = vsyncpa [#allocation4 + $0x1], 1 }
 0x170   :  { %485 = vsyncpa [#allocation5], 1 }
 0x171   :  { %487 = vsyncpa [#allocation5 + $0x1], 1 }

</bundles_post_ra>
